<compile_context>
chip_gen: v5e
topology: v5e:2x2
jax: 0.10.0
libtpu: 0.0.40
codegen_flags: <defaults>
</compile_context>

<pallas_src>
import jax
import jax.numpy as jnp
from jax.experimental import pallas as pl
from jax.experimental.pallas import tpu as pltpu


def _mlp_critic_kernel(x_ref, w1_ref, b1_ref, w2_ref, b2_ref, w3_ref, b3_ref,
                       o_ref):
    x = x_ref[...]                                            # (tile_b, D)

    # Layer 1: Linear + tanh   (MXU matmul, f32 accumulate)
    h = jnp.dot(x, w1_ref[...], preferred_element_type=jnp.float32)
    h = jnp.tanh(h + b1_ref[...])                             # (tile_b, H1)

    # Layer 2: Linear + tanh
    h = jnp.dot(h, w2_ref[...], preferred_element_type=jnp.float32)
    h = jnp.tanh(h + b2_ref[...])                             # (tile_b, H2)

    # Output layer (out_features == 1): skip the N=1 MXU matmul.  Transpose the
    # activations (XLU), multiply by the weight column (VPU, lane-broadcast of
    # the (H2, 1) column) and reduce over the sublane axis.  The result lands
    # lane-dense as (1, tile_b) with the batch on the lane axis.
    ht = h.T                                                  # (H2, tile_b)
    v = jnp.sum(ht * w3_ref[...], axis=0, keepdims=True)      # (1, tile_b)
    v = v + b3_ref[...]
    o_ref[...] = v.astype(o_ref.dtype)


def mlp_critic_forward(obs, params, *, tile_b=None):
    """Runs the fused MLP critic kernel.

    obs: (B, obs_dim) float32
    params: dict with w1 (D,H1), b1 (1,H1), w2 (H1,H2), b2 (1,H2),
            w3 (H2,1), b3 (1,1)
    returns: (B,) float32   (== torch.squeeze(v_net(obs), -1))
    """
    w1, b1 = params["w1"], params["b1"]
    w2, b2 = params["w2"], params["b2"]
    w3, b3 = params["w3"], params["b3"]

    B, D = obs.shape
    H1 = w1.shape[1]
    H2 = w2.shape[1]

    if tile_b is None:
        # 128-row tiles fill the v5e MXU rows; 256 fills v6e/v7x.  Only switch
        # to 256 once the batch is big enough that we still get >= 2 grid
        # steps (so both v7x TensorCores receive work).
        tile_b = 256 if B >= 512 else 128
    # Lane-dense (1, tile_b) output blocks require tile_b % 128 == 0.
    tile_b = ((tile_b + 127) // 128) * 128

    # Pad batch so the batch tile divides evenly (padded rows are sliced off).
    B_pad = ((B + tile_b - 1) // tile_b) * tile_b
    if B_pad != B:
        obs = jnp.pad(obs, ((0, B_pad - B), (0, 0)))

    grid = (B_pad // tile_b,)

    out = pl.pallas_call(
        _mlp_critic_kernel,
        out_shape=jax.ShapeDtypeStruct((1, B_pad), jnp.float32),
        grid=grid,
        in_specs=[
            # obs: tiled over the batch (sublane) axis only.
            pl.BlockSpec((tile_b, D), lambda i: (i, 0)),
            # weights / biases: full arrays, constant block index -> loaded
            # once and VMEM-resident across all grid steps (~4 KB total).
            pl.BlockSpec((D, H1), lambda i: (0, 0)),
            pl.BlockSpec((1, H1), lambda i: (0, 0)),
            pl.BlockSpec((H1, H2), lambda i: (0, 0)),
            pl.BlockSpec((1, H2), lambda i: (0, 0)),
            pl.BlockSpec((H2, 1), lambda i: (0, 0)),
            pl.BlockSpec((1, 1), lambda i: (0, 0)),
        ],
        # Lane-dense output: one (1, tile_b) row per grid step.
        out_specs=pl.BlockSpec((1, tile_b), lambda i: (0, i)),
        compiler_params=pltpu.CompilerParams(
            dimension_semantics=("parallel",)),
    )(obs, w1, b1, w2, b2, w3, b3)

    # Glue: drop batch padding and squeeze(-1), matching the PyTorch forward.
    return out[0, :B]


def init_mlp_critic_params(key, obs_dim, hidden_sizes):
    """Deterministic synthetic init (uniform +-1/sqrt(fan_in), like nn.Linear)."""
    sizes = [obs_dim] + list(hidden_sizes) + [1]
    params = {}
    for j in range(len(sizes) - 1):
        key, kw, kb = jax.random.split(key, 3)
        fan_in = sizes[j]
        bound = 1.0 / (fan_in ** 0.5)
        w = jax.random.uniform(kw, (sizes[j], sizes[j + 1]), jnp.float32,
                               minval=-bound, maxval=bound)
        b = jax.random.uniform(kb, (1, sizes[j + 1]), jnp.float32,
                               minval=-bound, maxval=bound)
        params[f"w{j + 1}"] = w
        params[f"b{j + 1}"] = b
    return params


if __name__ == "__main__":
    key = jax.random.PRNGKey(0)
    k_obs, k_par = jax.random.split(key)

    batch = 8
    obs_dim = 32
    hidden_sizes = (32, 32)   # activation = tanh

    obs = jax.random.normal(k_obs, (batch, obs_dim), jnp.float32)
    params = init_mlp_critic_params(k_par, obs_dim, hidden_sizes)

    v = mlp_critic_forward(obs, params)
    jax.block_until_ready(v)

    # Pure-JAX reference of the same MLP for a sanity check.
    h = jnp.tanh(obs @ params["w1"] + params["b1"])
    h = jnp.tanh(h @ params["w2"] + params["b2"])
    v_ref = (h @ params["w3"] + params["b3"])[:, 0]
    assert v.shape == (batch,)
    assert jnp.allclose(v, v_ref, atol=1e-5, rtol=1e-5)

    print("KERNEL_OK")
</pallas_src>

<mosaic_0001>
module attributes {stable_mosaic.version = 11 : i64} {
  func.func @_mlp_critic_kernel(%arg0: i32, %arg1: memref<128x32xf32, #tpu.memory_space<vmem>>, %arg2: memref<32x32xf32, #tpu.memory_space<vmem>>, %arg3: memref<1x32xf32, #tpu.memory_space<vmem>>, %arg4: memref<32x32xf32, #tpu.memory_space<vmem>>, %arg5: memref<1x32xf32, #tpu.memory_space<vmem>>, %arg6: memref<32x1xf32, #tpu.memory_space<vmem>>, %arg7: memref<1x1xf32, #tpu.memory_space<vmem>>, %arg8: memref<1x128xf32, #tpu.memory_space<vmem>>) attributes {dimension_semantics = [#tpu.dimension_semantics<parallel>], iteration_bounds = array<i64: 1>, scalar_prefetch = 0 : i64, scratch_operands = 0 : i64, tpu.core_type = #tpu.core_type<tc>, window_params = [{transform_indices = @transform_0, window_bounds = array<i64: 128, 32>}, {pipeline_mode = #tpu.pipeline_mode<synchronous>, transform_indices = @transform_1, window_bounds = array<i64: 32, 32>}, {pipeline_mode = #tpu.pipeline_mode<synchronous>, transform_indices = @transform_2, window_bounds = array<i64: 1, 32>}, {pipeline_mode = #tpu.pipeline_mode<synchronous>, transform_indices = @transform_3, window_bounds = array<i64: 32, 32>}, {pipeline_mode = #tpu.pipeline_mode<synchronous>, transform_indices = @transform_4, window_bounds = array<i64: 1, 32>}, {pipeline_mode = #tpu.pipeline_mode<synchronous>, transform_indices = @transform_5, window_bounds = array<i64: 32, 1>}, {pipeline_mode = #tpu.pipeline_mode<synchronous>, transform_indices = @transform_6, window_bounds = array<i64: 1, 1>}, {transform_indices = @transform_7, window_bounds = array<i64: 1, 128>}]} {
    %c0 = arith.constant 0 : index
    %c0_0 = arith.constant 0 : index
    %0 = vector.load %arg1[%c0, %c0_0] : memref<128x32xf32, #tpu.memory_space<vmem>>, vector<128x32xf32>
    %c0_1 = arith.constant 0 : index
    %c0_2 = arith.constant 0 : index
    %1 = vector.load %arg2[%c0_1, %c0_2] : memref<32x32xf32, #tpu.memory_space<vmem>>, vector<32x32xf32>
    %cst = arith.constant dense<0.000000e+00> : vector<128x32xf32>
    %2 = tpu.matmul %0, %1, %cst {dimension_numbers = #tpu.dot_dimension_numbers<[1], [0], [0], [1], [0, 0, 1, 1], [], []>} : vector<128x32xf32>, vector<32x32xf32>, vector<128x32xf32> -> vector<128x32xf32>
    %c0_3 = arith.constant 0 : index
    %c0_4 = arith.constant 0 : index
    %3 = vector.load %arg3[%c0_3, %c0_4] : memref<1x32xf32, #tpu.memory_space<vmem>>, vector<1x32xf32>
    %4 = vector.broadcast %3 : vector<1x32xf32> to vector<128x32xf32>
    %5 = arith.addf %2, %4 : vector<128x32xf32>
    %6 = math.tanh %5 : vector<128x32xf32>
    %c0_5 = arith.constant 0 : index
    %c0_6 = arith.constant 0 : index
    %7 = vector.load %arg4[%c0_5, %c0_6] : memref<32x32xf32, #tpu.memory_space<vmem>>, vector<32x32xf32>
    %cst_7 = arith.constant dense<0.000000e+00> : vector<128x32xf32>
    %8 = tpu.matmul %6, %7, %cst_7 {dimension_numbers = #tpu.dot_dimension_numbers<[1], [0], [0], [1], [0, 0, 1, 1], [], []>} : vector<128x32xf32>, vector<32x32xf32>, vector<128x32xf32> -> vector<128x32xf32>
    %c0_8 = arith.constant 0 : index
    %c0_9 = arith.constant 0 : index
    %9 = vector.load %arg5[%c0_8, %c0_9] : memref<1x32xf32, #tpu.memory_space<vmem>>, vector<1x32xf32>
    %10 = vector.broadcast %9 : vector<1x32xf32> to vector<128x32xf32>
    %11 = arith.addf %8, %10 : vector<128x32xf32>
    %12 = math.tanh %11 : vector<128x32xf32>
    %13 = tpu.transpose %12, [1, 0] : vector<128x32xf32> -> vector<32x128xf32>
    %c0_10 = arith.constant 0 : index
    %c0_11 = arith.constant 0 : index
    %14 = vector.load %arg6[%c0_10, %c0_11] : memref<32x1xf32, #tpu.memory_space<vmem>>, vector<32x1xf32>
    %15 = vector.broadcast %14 : vector<32x1xf32> to vector<32x128xf32>
    %16 = arith.mulf %13, %15 : vector<32x128xf32>
    %cst_12 = arith.constant dense<0.000000e+00> : vector<128xf32>
    %17 = vector.multi_reduction <add>, %16, %cst_12 [0] : vector<32x128xf32> to vector<128xf32>
    %18 = vector.shape_cast %17 : vector<128xf32> to vector<1x128xf32>
    %c0_13 = arith.constant 0 : index
    %c0_14 = arith.constant 0 : index
    %19 = vector.load %arg7[%c0_13, %c0_14] : memref<1x1xf32, #tpu.memory_space<vmem>>, vector<1x1xf32>
    %20 = vector.broadcast %19 : vector<1x1xf32> to vector<1x128xf32>
    %21 = arith.addf %18, %20 : vector<1x128xf32>
    %c0_15 = arith.constant 0 : index
    %c0_16 = arith.constant 0 : index
    %22 = vector.load %arg8[%c0_15, %c0_16] : memref<1x128xf32, #tpu.memory_space<vmem>>, vector<1x128xf32>
    tpu.vector_store %arg8[%c0_15, %c0_16], %21 {strides = array<i32>} : memref<1x128xf32, #tpu.memory_space<vmem>>, vector<1x128xf32>,
    return
  }
  func.func @transform_0(%arg0: i32) -> (i32, i32) {
    %c0_i32 = arith.constant 0 : i32
    %c0_i32_0 = arith.constant 0 : i32
    return %arg0, %c0_i32 : i32, i32
  }
  func.func @transform_1(%arg0: i32) -> (i32, i32) {
    %c0_i32 = arith.constant 0 : i32
    %c0_i32_0 = arith.constant 0 : i32
    %c0_i32_1 = arith.constant 0 : i32
    return %c0_i32, %c0_i32_0 : i32, i32
  }
  func.func @transform_2(%arg0: i32) -> (i32, i32) {
    %c0_i32 = arith.constant 0 : i32
    %c0_i32_0 = arith.constant 0 : i32
    %c0_i32_1 = arith.constant 0 : i32
    return %c0_i32, %c0_i32_0 : i32, i32
  }
  func.func @transform_3(%arg0: i32) -> (i32, i32) {
    %c0_i32 = arith.constant 0 : i32
    %c0_i32_0 = arith.constant 0 : i32
    %c0_i32_1 = arith.constant 0 : i32
    return %c0_i32, %c0_i32_0 : i32, i32
  }
  func.func @transform_4(%arg0: i32) -> (i32, i32) {
    %c0_i32 = arith.constant 0 : i32
    %c0_i32_0 = arith.constant 0 : i32
    %c0_i32_1 = arith.constant 0 : i32
    return %c0_i32, %c0_i32_0 : i32, i32
  }
  func.func @transform_5(%arg0: i32) -> (i32, i32) {
    %c0_i32 = arith.constant 0 : i32
    %c0_i32_0 = arith.constant 0 : i32
    %c0_i32_1 = arith.constant 0 : i32
    return %c0_i32, %c0_i32_0 : i32, i32
  }
  func.func @transform_6(%arg0: i32) -> (i32, i32) {
    %c0_i32 = arith.constant 0 : i32
    %c0_i32_0 = arith.constant 0 : i32
    %c0_i32_1 = arith.constant 0 : i32
    return %c0_i32, %c0_i32_0 : i32, i32
  }
  func.func @transform_7(%arg0: i32) -> (i32, i32) {
    %c0_i32 = arith.constant 0 : i32
    %c0_i32_0 = arith.constant 0 : i32
    return %c0_i32, %arg0 : i32, i32
  }
}

</mosaic_0001>

<bundles_post_ra>
// kernel: tpu_custom_call.1
= control target key start
LH: loop header
LB: loop body
LE: loop exit
PB: predicated region body
PF: predicated region fallthrough
CT: control target
= control target key end

     0   :  { %s760_s0 = inlined_call_operand.vmem [shape: f32[128,32], index: 0, kind: input, shape index: {}]   ;;  %s761_s1 = inlined_call_operand.vmem [shape: f32[32,32], index: 1, kind: input, shape index: {}]   ;;  %s762_s2 = inlined_call_operand.vmem [shape: f32[1,32], index: 2, kind: input, shape index: {}]   ;;  %s763_s3 = inlined_call_operand.vmem [shape: f32[32,32], index: 3, kind: input, shape index: {}]   ;;  %s764_s4 = inlined_call_operand.vmem [shape: f32[1,32], index: 4, kind: input, shape index: {}]   ;;  %s765_s5 = inlined_call_operand.vmem [shape: f32[32,1], index: 5, kind: input, shape index: {}]   ;;  %s766_s6 = inlined_call_operand.<no memory space> [shape: f32[1,1], index: 6, kind: input, shape index: {}]   ;;  %s767_s7 = inlined_call_operand.hbm [shape: f32[1,128], index: 7, kind: output, shape index: {}]  }
   0x1   :  { %v12_v0 = vstv %s766_s6 }
   0x2   :  { %13 = vst [vmem:[#allocation2] sm:$0x1] %v12_v0 }
   0x3   :  { %v48_v1 = vld [vmem:[%s761_s1 + $0x18] sm:$0xff]  ;;  %v47_v2 = vld [vmem:[%s761_s1 + $0x10] sm:$0xff]  ;;  %v46_v3 = vld [vmem:[%s761_s1 + $0x8] sm:$0xff] }
   0x4   :  { %114 = vmatpush.msra.mxu0 %v48_v1  ;;  %446 = vmatpush.msra.mxu2 %v48_v1 }
   0x6   :  { %115 = vmatpush.msra.mxu0 %v47_v2  ;;  %447 = vmatpush.msra.mxu2 %v47_v2 }
   0x7   :  { %14 = vsyncpa [#allocation4], 0  ;;  %v45_v4 = vld [vmem:[%s761_s1] sm:$0xff]  ;;  %vm53_vm0 = vcmask 261120   ;;  %v30_v6 = vld [vmem:[%s760_s0 + $0x8] sm:$0xff]  ;;  %s405_s11 = sshll.u32 %s767_s7, 4  ;;  %s406_s11 = int_to_ptr.hbm [resolvable:$true] %s405_s11 }
   0x8   :  { %116 = vmatpush.msra.mxu0 %v46_v3  ;;  %v29_v5 = vld [vmem:[%s760_s0] sm:$0xff]  ;;  %448 = vmatpush.msra.mxu2 %v46_v3  ;;  %v31_v7 = vld [vmem:[%s760_s0 + $0x10] sm:$0xff]  ;;  %v32_v9 = vld [vmem:[%s760_s0 + $0x18] sm:$0xff] }
   0x9   :  { %v37_v8 = vld [vmem:[%s760_s0 + $0x40] sm:$0xff]  ;;  %v38_v10 = vld [vmem:[%s760_s0 + $0x48] sm:$0xff]  ;;  %v39_v12 = vld [vmem:[%s760_s0 + $0x50] sm:$0xff] }
   0xa   :  { %117 = vmatpush.msra.mxu0 %v45_v4  ;;  %449 = vmatpush.msra.mxu2 %v45_v4  ;;  %v33_v11 = vld [vmem:[%s760_s0 + $0x20] sm:$0xff]  ;;  %v34_v13 = vld [vmem:[%s760_s0 + $0x28] sm:$0xff]  ;;  %v40_v14 = vld [vmem:[%s760_s0 + $0x58] sm:$0xff] }
   0xb   :  { %414 = vmatmul.msk.f32.vlgmr.msra.gmra.mxu0 %vm53_vm0, %v29_v5  ;;  %422 = vmatmul.msk.f32.vlgmr.msra.gmra.mxu2 %vm53_vm0, %v37_v8  ;;  %v35_v15 = vld [vmem:[%s760_s0 + $0x30] sm:$0xff]  ;;  %v41_v16 = vld [vmem:[%s760_s0 + $0x60] sm:$0xff]  ;;  %v36_v17 = vld [vmem:[%s760_s0 + $0x38] sm:$0xff] }
   0xc   :  { %v42_v18 = vld [vmem:[%s760_s0 + $0x68] sm:$0xff]  ;;  %v43_v19 = vld [vmem:[%s760_s0 + $0x70] sm:$0xff]  ;;  %v44_v20 = vld [vmem:[%s760_s0 + $0x78] sm:$0xff] }
   0xd   :  { %v186_v21 = vld [vmem:[%s763_s3 + $0x18] sm:$0xff]  ;;  %v185_v22 = vld [vmem:[%s763_s3 + $0x10] sm:$0xff]  ;;  %v184_v23 = vld [vmem:[%s763_s3 + $0x8] sm:$0xff] }
   0xe   :  { %251 = vmatpush.msra.mxu1 %v186_v21  ;;  %450 = vmatpush.msra.mxu3 %v186_v21  ;;  %v183_v24 = vld [vmem:[%s763_s3] sm:$0xff] }
   0xf   :  { %v687_v25 = vld [vmem:[%s762_s2] ss:$0 sm:$0xff] }
  0x10   :  { %252 = vmatpush.msra.mxu1 %v185_v22  ;;  %451 = vmatpush.msra.mxu3 %v185_v22  ;;  %v551_v22 = vmov 0  }
  0x11   :  { %456 = vset.pattern.permute.xlu1 %v551_v22  ;;  %457 = vset.pattern.permute.xlu2 %v551_v22 }
  0x12   :  { %253 = vmatpush.msra.mxu1 %v184_v23  ;;  %452 = vmatpush.msra.mxu3 %v184_v23 }
  0x13   :  { %415 = vmatmul.msk.f32.gmra.mxu0 %vm53_vm0, %v30_v6  ;;  %423 = vmatmul.msk.f32.gmra.mxu2 %vm53_vm0, %v38_v10  ;;  %v724_v10 = vld [vmem:[%s764_s4] ss:$0 sm:$0xff] }
  0x14   :  { %254 = vmatpush.msra.mxu1 %v183_v24  ;;  %453 = vmatpush.msra.mxu3 %v183_v24 }
  0x1b   :  { %416 = vmatmul.msk.f32.gmra.mxu0 %vm53_vm0, %v31_v7  ;;  %424 = vmatmul.msk.f32.gmra.mxu2 %vm53_vm0, %v39_v12 }
  0x23   :  { %417 = vmatmul.msk.f32.gmra.mxu0 %vm53_vm0, %v32_v9  ;;  %425 = vmatmul.msk.f32.gmra.mxu2 %vm53_vm0, %v40_v14 }
  0x2b   :  { %418 = vmatmul.msk.f32.gmra.mxu0 %vm53_vm0, %v33_v11  ;;  %426 = vmatmul.msk.f32.gmra.mxu2 %vm53_vm0, %v41_v16 }
  0x33   :  { %419 = vmatmul.msk.f32.gmra.mxu0 %vm53_vm0, %v34_v13  ;;  %427 = vmatmul.msk.f32.gmra.mxu2 %vm53_vm0, %v42_v18 }
  0x3b   :  { %420 = vmatmul.msk.f32.gmra.mxu0 %vm53_vm0, %v35_v15  ;;  %428 = vmatmul.msk.f32.gmra.mxu2 %vm53_vm0, %v43_v19 }
  0x43   :  { %421 = vmatmul.msk.f32.gmra.mxu0 %vm53_vm0, %v36_v17  ;;  %429 = vmatmul.msk.f32.gmra.mxu2 %vm53_vm0, %v44_v20 }
  0x88   :  { %v119_v26 = vpop.f32.mrf.mxu0 }
  0x89   :  { %v120_v27 = vadd.f32 %v687_v25, %v119_v26  ;;  %v352_v26 = vld [vmem:[%s765_s5] sm:$0xff] }
  0x8a   :  { %358 = vperm.xlu1 %456, %v352_v26  }
  0x8b   :  { %461 = vtanh.f32 %v120_v27 }
  0x8e   :  { %v143_v37 = vpop.f32.mrf.mxu2 }
  0x8f   :  { %v144_v38 = vadd.f32 %v687_v25, %v143_v37 }
  0x90   :  { %v122_v28 = vpop.f32.mrf.mxu0 }
  0x91   :  { %v462_v29 = vpop.eup %461  ;;  %v123_v30 = vadd.f32 %v687_v25, %v122_v28 }
  0x92   :  { %430 = vmatmul.msk.f32.vlgmr.msra.gmra.mxu1 %vm53_vm0, %v462_v29 }
  0x93   :  { %463 = vtanh.f32 %v123_v30  ;;  %v353_v30 = vld [vmem:[%s765_s5 + $0x8] sm:$0xff] }
  0x94   :  { %363 = vperm.xlu1 %456, %v353_v30  }
  0x96   :  { %v146_v42 = vpop.f32.mrf.mxu2 }
  0x97   :  { %v147_v44 = vadd.f32 %v687_v25, %v146_v42 }
  0x98   :  { %v125_v31 = vpop.f32.mrf.mxu0 }
  0x99   :  { %v464_v32 = vpop.eup %463  ;;  %v126_v33 = vadd.f32 %v687_v25, %v125_v31 }
  0x9a   :  { %431 = vmatmul.msk.f32.gmra.mxu1 %vm53_vm0, %v464_v32 }
  0x9b   :  { %465 = vtanh.f32 %v126_v33 }
  0x9e   :  { %v149_v48 = vpop.f32.mrf.mxu2 }
  0x9f   :  { %v150_v50 = vadd.f32 %v687_v25, %v149_v48 }
  0xa0   :  { %v128_v34 = vpop.f32.mrf.mxu0 }
  0xa1   :  { %v466_v35 = vpop.eup %465  ;;  %v129_v36 = vadd.f32 %v687_v25, %v128_v34 }
  0xa2   :  { %432 = vmatmul.msk.f32.gmra.mxu1 %vm53_vm0, %v466_v35  ;;  %v389_v35 = vld [vmem:[#allocation2] sm:$0x1] }
  0xa3   :  { %467 = vtanh.f32 %v129_v36  ;;  %392 = vperm.xlu1 %456, %v389_v35  }
  0xa4   :  { %469 = vtanh.f32 %v144_v38 }
  0xa6   :  { %v152_v54 = vpop.f32.mrf.mxu2 }
  0xa7   :  { %v153_v56 = vadd.f32 %v687_v25, %v152_v54 }
  0xa8   :  { %v131_v39 = vpop.f32.mrf.mxu0 }
  0xa9   :  { %v468_v40 = vpop.eup %467  ;;  %v132_v41 = vadd.f32 %v687_v25, %v131_v39 }
  0xaa   :  { %433 = vmatmul.msk.f32.gmra.mxu1 %vm53_vm0, %v468_v40  ;;  %v470_v43 = vpop.eup %469 }
  0xab   :  { %471 = vtanh.f32 %v132_v41  ;;  %438 = vmatmul.msk.f32.vlgmr.msra.gmra.mxu3 %vm53_vm0, %v470_v43  ;;  %v354_v43 = vld [vmem:[%s765_s5 + $0x10] sm:$0xff] }
  0xac   :  { %473 = vtanh.f32 %v147_v44  ;;  %368 = vperm.xlu2 %457, %v354_v43  }
  0xae   :  { %v155_v60 = vpop.f32.mrf.mxu2 }
  0xaf   :  { %v156_v62 = vadd.f32 %v687_v25, %v155_v60 }
  0xb0   :  { %v134_v45 = vpop.f32.mrf.mxu0 }
  0xb1   :  { %v472_v46 = vpop.eup %471  ;;  %v135_v47 = vadd.f32 %v687_v25, %v134_v45 }
  0xb2   :  { %434 = vmatmul.msk.f32.gmra.mxu1 %vm53_vm0, %v472_v46  ;;  %v474_v49 = vpop.eup %473 }
  0xb3   :  { %475 = vtanh.f32 %v135_v47  ;;  %439 = vmatmul.msk.f32.gmra.mxu3 %vm53_vm0, %v474_v49  ;;  %v355_v47 = vld [vmem:[%s765_s5 + $0x18] sm:$0xff]  ;;  %s552_s5 = smov [#allocation3]  }
  0xb4   :  { %477 = vtanh.f32 %v150_v50  ;;  %373 = vperm.xlu2 %457, %v355_v47   ;;  %s403_s9 = sshll.u32 %s552_s5, 4  ;;  %s404_s9 = int_to_ptr.vmem [resolvable:$true] %s403_s9 }
  0xb6   :  { %v158_v0 = vpop.f32.mrf.mxu2 }
  0xb7   :  { %v159_v2 = vadd.f32 %v687_v25, %v158_v0 }
  0xb8   :  { %v137_v51 = vpop.f32.mrf.mxu0 }
  0xb9   :  { %v476_v52 = vpop.eup %475  ;;  %v138_v53 = vadd.f32 %v687_v25, %v137_v51 }
  0xba   :  { %435 = vmatmul.msk.f32.gmra.mxu1 %vm53_vm0, %v476_v52  ;;  %v478_v55 = vpop.eup %477 }
  0xbb   :  { %479 = vtanh.f32 %v138_v53  ;;  %440 = vmatmul.msk.f32.gmra.mxu3 %vm53_vm0, %v478_v55 }
  0xbc   :  { %481 = vtanh.f32 %v153_v56 }
  0xbe   :  { %v161_v3 = vpop.f32.mrf.mxu2 }
  0xbf   :  { %v162_v5 = vadd.f32 %v687_v25, %v161_v3 }
  0xc0   :  { %v140_v57 = vpop.f32.mrf.mxu0 }
  0xc1   :  { %v480_v58 = vpop.eup %479  ;;  %v141_v59 = vadd.f32 %v687_v25, %v140_v57 }
  0xc2   :  { %436 = vmatmul.msk.f32.gmra.mxu1 %vm53_vm0, %v480_v58  ;;  %v482_v61 = vpop.eup %481 }
  0xc3   :  { %483 = vtanh.f32 %v141_v59  ;;  %441 = vmatmul.msk.f32.gmra.mxu3 %vm53_vm0, %v482_v61 }
  0xc4   :  { %485 = vtanh.f32 %v156_v62 }
  0xc5   :  { %487 = vtanh.f32 %v159_v2 }
  0xc6   :  { %489 = vtanh.f32 %v162_v5  ;;  %v164_v6 = vpop.f32.mrf.mxu2 }
  0xc7   :  { %v165_v8 = vadd.f32 %v687_v25, %v164_v6 }
  0xc9   :  { %v484_v63 = vpop.eup %483  ;;  %491 = vtanh.f32 %v165_v8 }
  0xca   :  { %437 = vmatmul.msk.f32.gmra.mxu1 %vm53_vm0, %v484_v63  ;;  %v486_v1 = vpop.eup %485 }
  0xcb   :  { %442 = vmatmul.msk.f32.gmra.mxu3 %vm53_vm0, %v486_v1  ;;  %v488_v4 = vpop.eup %487 }
  0xcc   :  { %v490_v7 = vpop.eup %489 }
  0xcf   :  { %v492_v9 = vpop.eup %491 }
  0xd3   :  { %443 = vmatmul.msk.f32.gmra.mxu3 %vm53_vm0, %v488_v4 }
  0xdb   :  { %444 = vmatmul.msk.f32.gmra.mxu3 %vm53_vm0, %v490_v7 }
  0xe3   :  { %445 = vmatmul.msk.f32.gmra.mxu3 %vm53_vm0, %v492_v9 }
  0xfc   :  { %v359_v2 = vpop.permute.xlu1 %358 }
 0x106   :  { %v369_v4 = vpop.permute.xlu2 %368  ;;  %v364_v5 = vpop.permute.xlu1 %363 }
 0x10f   :  { %v256_v11 = vpop.f32.mrf.mxu1 }
 0x110   :  { %v257_v12 = vadd.f32 %v724_v10, %v256_v11 }
 0x112   :  { %493 = vtanh.f32 %v257_v12  ;;  %v374_v12 = vpop.permute.xlu2 %373 }
 0x117   :  { %v259_v13 = vpop.f32.mrf.mxu1 }
 0x118   :  { %v494_v14 = vpop.eup %493  ;;  %v260_v15 = vadd.f32 %v724_v10, %v259_v13 }
 0x119   :  { %320 = vxpose.xlu0.b32.start [1/16] (narrow) %v494_v14, 32 }
 0x11a   :  { %495 = vtanh.f32 %v260_v15 }
 0x11f   :  { %v262_v16 = vpop.f32.mrf.mxu1 }
 0x120   :  { %v496_v17 = vpop.eup %495  ;;  %v263_v18 = vadd.f32 %v724_v10, %v262_v16 }
 0x121   :  { %321 = vxpose.xlu0.b32.cont [2/16] (narrow) %v496_v17, 32 }
 0x122   :  { %497 = vtanh.f32 %v263_v18 }
 0x127   :  { %v265_v19 = vpop.f32.mrf.mxu1 }
 0x128   :  { %v498_v20 = vpop.eup %497  ;;  %v266_v21 = vadd.f32 %v724_v10, %v265_v19 }
 0x129   :  { %322 = vxpose.xlu0.b32.cont [3/16] (narrow) %v498_v20, 32  ;;  %v393_v20 = vpop.permute.xlu1 %392 }
 0x12a   :  { %499 = vtanh.f32 %v266_v21 }
 0x12e   :  { %v280_v31 = vpop.f32.mrf.mxu3 }
 0x12f   :  { %v268_v23 = vpop.f32.mrf.mxu1  ;;  %v281_v40 = vadd.f32 %v724_v10, %v280_v31 }
 0x130   :  { %v500_v24 = vpop.eup %499  ;;  %v269_v25 = vadd.f32 %v724_v10, %v268_v23 }
 0x131   :  { %323 = vxpose.xlu0.b32.cont [4/16] (narrow) %v500_v24, 32  ;;  %v395_v24 = vperm.slane %v393_v20, 0 }
 0x132   :  { %501 = vtanh.f32 %v269_v25 }
 0x136   :  { %v283_v36 = vpop.f32.mrf.mxu3 }
 0x137   :  { %v271_v27 = vpop.f32.mrf.mxu1  ;;  %v284_v44 = vadd.f32 %v724_v10, %v283_v36 }
 0x138   :  { %v502_v28 = vpop.eup %501  ;;  %v272_v29 = vadd.f32 %v724_v10, %v271_v27 }
 0x139   :  { %324 = vxpose.xlu0.b32.cont [5/16] (narrow) %v502_v28, 32 }
 0x13a   :  { %503 = vtanh.f32 %v272_v29 }
 0x13e   :  { %v286_v41 = vpop.f32.mrf.mxu3 }
 0x13f   :  { %v274_v32 = vpop.f32.mrf.mxu1  ;;  %v287_v48 = vadd.f32 %v724_v10, %v286_v41 }
 0x140   :  { %v504_v33 = vpop.eup %503  ;;  %v275_v34 = vadd.f32 %v724_v10, %v274_v32 }
 0x141   :  { %325 = vxpose.xlu0.b32.cont [6/16] (narrow) %v504_v33, 32 }
 0x142   :  { %505 = vtanh.f32 %v275_v34 }
 0x146   :  { %v289_v46 = vpop.f32.mrf.mxu3 }
 0x147   :  { %v277_v37 = vpop.f32.mrf.mxu1  ;;  %v290_v51 = vadd.f32 %v724_v10, %v289_v46 }
 0x148   :  { %v506_v38 = vpop.eup %505  ;;  %v278_v39 = vadd.f32 %v724_v10, %v277_v37 }
 0x149   :  { %326 = vxpose.xlu0.b32.cont [7/16] (narrow) %v506_v38, 32 }
 0x14a   :  { %507 = vtanh.f32 %v278_v39 }
 0x14b   :  { %509 = vtanh.f32 %v281_v40 }
 0x14c   :  { %511 = vtanh.f32 %v284_v44 }
 0x14d   :  { %513 = vtanh.f32 %v287_v48 }
 0x14e   :  { %v292_v50 = vpop.f32.mrf.mxu3  ;;  %515 = vtanh.f32 %v290_v51 }
 0x14f   :  { %v293_v53 = vadd.f32 %v724_v10, %v292_v50 }
 0x150   :  { %v508_v42 = vpop.eup %507 }
 0x151   :  { %327 = vxpose.xlu0.b32.cont [8/16] (narrow) %v508_v42, 32  ;;  %v510_v45 = vpop.eup %509  ;;  %517 = vtanh.f32 %v293_v53 }
 0x152   :  { %v512_v49 = vpop.eup %511 }
 0x153   :  { %v514_v52 = vpop.eup %513 }
 0x154   :  { %v516_v55 = vpop.eup %515 }
 0x156   :  { %v295_v54 = vpop.f32.mrf.mxu3 }
 0x157   :  { %v296_v56 = vadd.f32 %v724_v10, %v295_v54  ;;  %v518_v57 = vpop.eup %517 }
 0x159   :  { %328 = vxpose.xlu0.b32.cont [9/16] (narrow) %v510_v45, 32  ;;  %519 = vtanh.f32 %v296_v56 }
 0x15e   :  { %v298_v58 = vpop.f32.mrf.mxu3 }
 0x15f   :  { %v299_v59 = vadd.f32 %v724_v10, %v298_v58  ;;  %v520_v60 = vpop.eup %519 }
 0x161   :  { %329 = vxpose.xlu0.b32.cont [10/16] (narrow) %v512_v49, 32  ;;  %521 = vtanh.f32 %v299_v59 }
 0x166   :  { %v301_v61 = vpop.f32.mrf.mxu3 }
 0x167   :  { %v302_v62 = vadd.f32 %v724_v10, %v301_v61  ;;  %v522_v63 = vpop.eup %521 }
 0x169   :  { %330 = vxpose.xlu0.b32.cont [11/16] (narrow) %v514_v52, 32  ;;  %523 = vtanh.f32 %v302_v62 }
 0x16f   :  { %v524_v0 = vpop.eup %523 }
 0x171   :  { %331 = vxpose.xlu0.b32.cont [12/16] (narrow) %v516_v55, 32 }
 0x179   :  { %332 = vxpose.xlu0.b32.cont [13/16] (narrow) %v518_v57, 32 }
 0x181   :  { %333 = vxpose.xlu0.b32.cont [14/16] (narrow) %v520_v60, 32 }
 0x189   :  { %334 = vxpose.xlu0.b32.cont [15/16] (narrow) %v522_v63, 32 }
 0x191   :  { %335 = vxpose.xlu0.b32.end [16/16] (narrow) %v524_v0, 32 }
 0x1bd   :  { %v336_v1 = vpop.trf.xlu0 }
 0x1be   :  { %v376_v7 = vmul.f32 %v359_v2, %v336_v1 }
 0x1c5   :  { %v337_v3 = vpop.trf.xlu0 }
 0x1c6   :  { %v377_v8 = vmul.f32 %v364_v5, %v337_v3 }
 0x1c8   :  { %v380_v9 = vadd.f32 %v377_v8, %v376_v7 }
 0x1cd   :  { %v338_v6 = vpop.trf.xlu0 }
 0x1ce   :  { %v378_v11 = vmul.f32 %v369_v4, %v338_v6 }
 0x1d0   :  { %v381_v14 = vadd.f32 %v380_v9, %v378_v11 }
 0x1d5   :  { %v339_v13 = vpop.trf.xlu0 }
 0x1d6   :  { %v379_v15 = vmul.f32 %v374_v12, %v339_v13 }
 0x1d8   :  { %v382_v10 = vadd.f32 %v381_v14, %v379_v15 }
 0x1da   :  { %v383_v16 = vrot.slane %v382_v10, 4 }
 0x1dc   :  { %v384_v17 = vadd.f32 %v383_v16, %v382_v10 }
 0x1de   :  { %v385_v18 = vrot.slane %v384_v17, 2 }
 0x1e0   :  { %v386_v19 = vadd.f32 %v385_v18, %v384_v17 }
 0x1e2   :  { %v387_v21 = vrot.slane %v386_v19, 1 }
 0x1e4   :  { %v388_v23 = vadd.f32 %v387_v21, %v386_v19 }
 0x1e6   :  { %v396_v25 = vadd.f32 %v395_v24, %v388_v23 }
 0x1e8   :  { %397 = vst [vmem:[#allocation3] sm:$0x1] %v396_v25 }
 0x1e9   :  { %408 = dma.vmem_to_hbm [thread:$0]  %s404_s9, 16, %s406_s11, [#allocation4]  }
 0x1f8   :  { %458 = vset.pattern.permute.xlu0 %v551_v22 }
 0x1f9   :  { %549 = dma.done.wait [#allocation4], 16  }
 0x1fa   :  { %550 = vsyncadd [#allocation4], 4294967280 }
 0x1fb   :  { %413 = vsyncpa [#allocation4], 1 }

</bundles_post_ra>
